<compile_context>
chip_gen: v5e
topology: v5e:2x2
jax: 0.10.0
libtpu: 0.0.40
codegen_flags: <defaults>
</compile_context>

<pallas_src>
import numpy as np
import jax
import jax.numpy as jnp
from jax.experimental import pallas as pl
from jax.experimental.pallas import tpu as pltpu

LAYER_NORM_EPS = 1e-12  # BERT-style config.layer_norm_eps


def _round_up(x, m):
    return (x + m - 1) // m * m


# ----------------------------------------------------------------------------
# Fused Pallas kernel:
#   dense -> gelu(erf) -> layernorm -> candidate logits -> masked-sum (folded)
#   -> softmax over the candidates
# ----------------------------------------------------------------------------
def cloze_head_kernel(x_ref, w1_ref, b1_ref, g_ref, beta_ref, wc_ref, bc_ref,
                      o_ref):
    # ---- dense (bf16 MXU inputs, f32 accumulation) ----
    x = x_ref[...].astype(jnp.bfloat16)                               # [tn, H]
    h = jnp.dot(x, w1_ref[...], preferred_element_type=jnp.float32)   # [tn, H] f32
    h = h + b1_ref[...]
    # ---- F.gelu (exact erf form), f32 ----
    h = 0.5 * h * (1.0 + jax.lax.erf(h * 0.7071067811865476))
    # ---- nn.LayerNorm (biased variance, eps = layer_norm_eps), f32 ----
    mu = jnp.mean(h, axis=-1, keepdims=True)
    var = jnp.mean(jnp.square(h - mu), axis=-1, keepdims=True)
    h = (h - mu) * jax.lax.rsqrt(var + LAYER_NORM_EPS)
    h = h * g_ref[...] + beta_ref[...]                                # [tn, H]

    # ---- candidate scores: s[n, c] = <h[n], w_eff[c, n]> + b_eff[n, c] ----
    # w_eff already folds the per-sub-token mask and the sum over sub-tokens,
    # so this is exactly (full-vocab logits -> gather -> *mask -> sum(-1)).
    ncand = wc_ref.shape[0]                                           # static (== 4)
    cols = []
    for c in range(ncand):
        cols.append(jnp.sum(h * wc_ref[c], axis=-1, keepdims=True))   # [tn, 1]
    s = jnp.concatenate(cols, axis=-1) + bc_ref[...]                  # [tn, C]

    # ---- softmax over the candidates (fused epilogue) ----
    m = jnp.max(s, axis=-1, keepdims=True)
    e = jnp.exp(s - m)
    o_ref[...] = e / jnp.sum(e, axis=-1, keepdims=True)


def cloze_head(x, w1, b1, gamma, beta, wc, bc, *, tn=None):
    """x: [N, H] f32, w1: [H, H] bf16, b1/gamma/beta: [1, H] f32,
    wc: [C, N, H] f32 (masked, sub-token-summed decoder rows per candidate),
    bc: [N, C] f32.  Returns softmaxed candidate scores [N, C] f32."""
    n, hdim = x.shape
    ncand = wc.shape[0]
    if tn is None:
        # MXU-friendly row tile; pad rows to a multiple of 8 (sublane) and cap
        # at 128 so [tn, H] @ [H, H] fills a full MXU pass.
        tn = min(128, _round_up(max(n, 1), 8))
    n_pad = _round_up(max(n, 1), tn)
    if n_pad != n:
        pad = n_pad - n
        x = jnp.pad(x, ((0, pad), (0, 0)))
        wc = jnp.pad(wc, ((0, 0), (0, pad), (0, 0)))
        bc = jnp.pad(bc, ((0, pad), (0, 0)))

    out = pl.pallas_call(
        cloze_head_kernel,
        out_shape=jax.ShapeDtypeStruct((n_pad, ncand), jnp.float32),
        grid_spec=pltpu.PrefetchScalarGridSpec(
            num_scalar_prefetch=0,
            grid=(n_pad // tn,),
            in_specs=[
                pl.BlockSpec((tn, hdim), lambda i: (i, 0)),            # hidden rows
                pl.BlockSpec((hdim, hdim), lambda i: (0, 0)),          # dense W (bf16)
                pl.BlockSpec((1, hdim), lambda i: (0, 0)),             # dense b
                pl.BlockSpec((1, hdim), lambda i: (0, 0)),             # LN gamma
                pl.BlockSpec((1, hdim), lambda i: (0, 0)),             # LN beta
                pl.BlockSpec((ncand, tn, hdim), lambda i: (0, i, 0)),  # candidate W
                pl.BlockSpec((tn, ncand), lambda i: (i, 0)),           # candidate b
            ],
            out_specs=pl.BlockSpec((tn, ncand), lambda i: (i, 0)),
        ),
        compiler_params=pltpu.CompilerParams(
            dimension_semantics=("parallel",)),  # row tiles shard across v7x's 2 TCs
    )(x, w1, b1, gamma, beta, wc, bc)
    return out[:n]


# ----------------------------------------------------------------------------
# Glue (host / plain JAX): repadding, encoder stand-in, gathers, reshapes
# ----------------------------------------------------------------------------
def repadding(article, article_mask):
    # Host-side preprocessing (single device->host sync, done once per batch,
    # outside the device compute path) — mirrors the PyTorch helper's host loop.
    lens = np.asarray(jnp.sum(article != 0, axis=1))
    max_len = max(int(lens.max()), 1)
    return article[:, :max_len], article_mask[:, :max_len]


class ClozeTestModelPallas:
    def __init__(self, key, hidden_size=128, vocab_size=256):
        self.hidden_size = hidden_size
        self.vocab_size = vocab_size
        std = 0.02  # config.initializer_range
        k_emb, k_w1, k_w2 = jax.random.split(key, 3)
        # TODO(synk): pretrained transformer encoder (AutoModel.from_pretrained)
        # replaced by a deterministic embedding lookup producing last_hidden_state.
        self.embedding = std * jax.random.normal(
            k_emb, (vocab_size, hidden_size), jnp.float32)
        # PredictionHead.init_weights: Linear W ~ N(0, 0.02), biases 0,
        # LN weight 1 / bias 0, decoder.bias tied to self.bias (zeros).
        self.w_dense = (std * jax.random.normal(
            k_w1, (hidden_size, hidden_size), jnp.float32)).astype(jnp.bfloat16)
        self.b_dense = jnp.zeros((1, hidden_size), jnp.float32)
        self.ln_gamma = jnp.ones((1, hidden_size), jnp.float32)
        self.ln_beta = jnp.zeros((1, hidden_size), jnp.float32)
        # decoder kept in PyTorch [vocab, hidden] layout so candidate rows can
        # be gathered directly; bias tied to self.bias (zeros).
        self.w_decoder = std * jax.random.normal(
            k_w2, (vocab_size, hidden_size), jnp.float32)
        self.b_decoder = jnp.zeros((vocab_size,), jnp.float32)

    def _encoder(self, article, article_mask):
        h = jnp.take(self.embedding, article, axis=0)                 # [B, L, H]
        return h * article_mask[..., None].astype(jnp.float32)

    def forward(self, batch):
        article, option, answer, article_mask, option_mask, mask, blank_pos, _ = batch
        article, article_mask = repadding(article, article_mask)
        B, O, C, K = option.shape
        H = self.hidden_size

        last_hidden_state = self._encoder(article, article_mask)      # [B, L, H]

        # torch.gather(last_hidden_state, 1, blank_pos.expand(B, O, H))
        idx = jnp.broadcast_to(blank_pos[:, :, None], (B, O, H))
        masked_hidden = jnp.take_along_axis(last_hidden_state, idx, axis=1)  # [B, O, H]

        # Fold   full-vocab logits -> gather(option) -> * option_mask -> sum(-1)
        # into effective per-candidate decoder weights/biases (exact identity):
        #   sum_k m_k (h . w[opt_k] + b[opt_k]) = h . (sum_k m_k w[opt_k]) + sum_k m_k b[opt_k]
        mf = option_mask.astype(jnp.float32)                          # [B,O,C,K]
        w_rows = jnp.take(self.w_decoder, option, axis=0)             # [B,O,C,K,H]
        w_eff = jnp.sum(mf[..., None] * w_rows, axis=3)               # [B,O,C,H]
        b_eff = jnp.sum(mf * jnp.take(self.b_decoder, option, axis=0), axis=-1)  # [B,O,C]

        wc = jnp.transpose(w_eff.reshape(B * O, C, H), (1, 0, 2))     # [C, N, H]
        bc = b_eff.reshape(B * O, C)                                  # [N, C]

        out = cloze_head(
            masked_hidden.reshape(B * O, H),
            self.w_dense, self.b_dense, self.ln_gamma, self.ln_beta,
            wc, bc)                                                   # [N, C] softmax
        return B, O, out                                              # out == view(-1, 4)


if __name__ == "__main__":
    key = jax.random.PRNGKey(0)
    k_model, k_art, k_opt, k_pos, k_msk = jax.random.split(key, 5)

    B, O, C, K, L = 2, 4, 4, 2, 16      # batch, blanks, candidates, sub-tokens, article len
    model = ClozeTestModelPallas(k_model, hidden_size=128, vocab_size=256)

    article = jax.random.randint(k_art, (B, L), 1, model.vocab_size, dtype=jnp.int32)
    article = article.at[0, 12:].set(0)  # trailing padding to exercise repadding
    article_mask = (article != 0).astype(jnp.int32)
    option = jax.random.randint(k_opt, (B, O, C, K), 1, model.vocab_size, dtype=jnp.int32)
    option_mask = (jax.random.uniform(k_msk, (B, O, C, K)) > 0.3).astype(jnp.int32)
    option_mask = option_mask.at[..., 0].set(1)
    blank_pos = jax.random.randint(k_pos, (B, O), 0, 12, dtype=jnp.int32)
    answer = jnp.zeros((B, O), jnp.int32)
    mask = jnp.ones((B, O), jnp.int32)

    batch = (article, option, answer, article_mask, option_mask, mask, blank_pos, None)
    bs, on, out = model.forward(batch)
    out = jax.block_until_ready(out)
    assert out.shape == (B * O, C)
    assert bool(jnp.all(jnp.isfinite(out)))
    # rows of the softmax output must sum to 1
    assert bool(jnp.all(jnp.abs(jnp.sum(out, axis=-1) - 1.0) < 1e-5))
    print("KERNEL_OK")
</pallas_src>

<mosaic_0001>
module attributes {stable_mosaic.version = 11 : i64} {
  func.func @cloze_head_kernel(%arg0: i32, %arg1: memref<8x128xf32, #tpu.memory_space<vmem>>, %arg2: memref<128x128xbf16, #tpu.memory_space<vmem>>, %arg3: memref<1x128xf32, #tpu.memory_space<vmem>>, %arg4: memref<1x128xf32, #tpu.memory_space<vmem>>, %arg5: memref<1x128xf32, #tpu.memory_space<vmem>>, %arg6: memref<4x8x128xf32, #tpu.memory_space<vmem>>, %arg7: memref<8x4xf32, #tpu.memory_space<vmem>>, %arg8: memref<8x4xf32, #tpu.memory_space<vmem>>) attributes {dimension_semantics = [#tpu.dimension_semantics<parallel>], iteration_bounds = array<i64: 1>, scalar_prefetch = 0 : i64, scratch_operands = 0 : i64, tpu.core_type = #tpu.core_type<tc>, window_params = [{transform_indices = @transform_0, window_bounds = array<i64: 8, 128>}, {pipeline_mode = #tpu.pipeline_mode<synchronous>, transform_indices = @transform_1, window_bounds = array<i64: 128, 128>}, {pipeline_mode = #tpu.pipeline_mode<synchronous>, transform_indices = @transform_2, window_bounds = array<i64: 1, 128>}, {pipeline_mode = #tpu.pipeline_mode<synchronous>, transform_indices = @transform_3, window_bounds = array<i64: 1, 128>}, {pipeline_mode = #tpu.pipeline_mode<synchronous>, transform_indices = @transform_4, window_bounds = array<i64: 1, 128>}, {transform_indices = @transform_5, window_bounds = array<i64: 4, 8, 128>}, {transform_indices = @transform_6, window_bounds = array<i64: 8, 4>}, {transform_indices = @transform_7, window_bounds = array<i64: 8, 4>}]} {
    %c0 = arith.constant 0 : index
    %c0_0 = arith.constant 0 : index
    %0 = vector.load %arg1[%c0, %c0_0] : memref<8x128xf32, #tpu.memory_space<vmem>>, vector<8x128xf32>
    %1 = arith.truncf %0 : vector<8x128xf32> to vector<8x128xbf16>
    %c0_1 = arith.constant 0 : index
    %c0_2 = arith.constant 0 : index
    %2 = vector.load %arg2[%c0_1, %c0_2] : memref<128x128xbf16, #tpu.memory_space<vmem>>, vector<128x128xbf16>
    %cst = arith.constant dense<0.000000e+00> : vector<8x128xf32>
    %3 = tpu.matmul %1, %2, %cst {dimension_numbers = #tpu.dot_dimension_numbers<[1], [0], [0], [1], [0, 0, 1, 1], [], []>} : vector<8x128xbf16>, vector<128x128xbf16>, vector<8x128xf32> -> vector<8x128xf32>
    %c0_3 = arith.constant 0 : index
    %c0_4 = arith.constant 0 : index
    %4 = vector.load %arg3[%c0_3, %c0_4] : memref<1x128xf32, #tpu.memory_space<vmem>>, vector<1x128xf32>
    %5 = vector.broadcast %4 : vector<1x128xf32> to vector<8x128xf32>
    %6 = arith.addf %3, %5 : vector<8x128xf32>
    %cst_5 = arith.constant 5.000000e-01 : f32
    %7 = vector.broadcast %cst_5 : f32 to vector<8x128xf32>
    %8 = arith.mulf %7, %6 : vector<8x128xf32>
    %cst_6 = arith.constant 0.707106769 : f32
    %9 = vector.broadcast %cst_6 : f32 to vector<8x128xf32>
    %10 = arith.mulf %6, %9 : vector<8x128xf32>
    %11 = math.erf %10 : vector<8x128xf32>
    %cst_7 = arith.constant 1.000000e+00 : f32
    %12 = vector.broadcast %cst_7 : f32 to vector<8x128xf32>
    %13 = arith.addf %12, %11 : vector<8x128xf32>
    %14 = arith.mulf %8, %13 : vector<8x128xf32>
    %cst_8 = arith.constant dense<0.000000e+00> : vector<8xf32>
    %15 = vector.multi_reduction <add>, %14, %cst_8 [1] : vector<8x128xf32> to vector<8xf32>
    %16 = vector.shape_cast %15 : vector<8xf32> to vector<8x1xf32>
    %cst_9 = arith.constant 1.280000e+02 : f32
    %17 = vector.broadcast %cst_9 : f32 to vector<8x1xf32>
    %18 = arith.divf %16, %17 : vector<8x1xf32>
    %19 = vector.broadcast %18 : vector<8x1xf32> to vector<8x128xf32>
    %20 = arith.subf %14, %19 : vector<8x128xf32>
    %21 = arith.mulf %20, %20 : vector<8x128xf32>
    %cst_10 = arith.constant dense<0.000000e+00> : vector<8xf32>
    %22 = vector.multi_reduction <add>, %21, %cst_10 [1] : vector<8x128xf32> to vector<8xf32>
    %23 = vector.shape_cast %22 : vector<8xf32> to vector<8x1xf32>
    %cst_11 = arith.constant 1.280000e+02 : f32
    %24 = vector.broadcast %cst_11 : f32 to vector<8x1xf32>
    %25 = arith.divf %23, %24 : vector<8x1xf32>
    %26 = vector.broadcast %18 : vector<8x1xf32> to vector<8x128xf32>
    %27 = arith.subf %14, %26 : vector<8x128xf32>
    %cst_12 = arith.constant 9.99999996E-13 : f32
    %28 = vector.broadcast %cst_12 : f32 to vector<8x1xf32>
    %29 = arith.addf %25, %28 : vector<8x1xf32>
    %30 = math.rsqrt %29 : vector<8x1xf32>
    %31 = vector.broadcast %30 : vector<8x1xf32> to vector<8x128xf32>
    %32 = arith.mulf %27, %31 : vector<8x128xf32>
    %c0_13 = arith.constant 0 : index
    %c0_14 = arith.constant 0 : index
    %33 = vector.load %arg4[%c0_13, %c0_14] : memref<1x128xf32, #tpu.memory_space<vmem>>, vector<1x128xf32>
    %34 = vector.broadcast %33 : vector<1x128xf32> to vector<8x128xf32>
    %35 = arith.mulf %32, %34 : vector<8x128xf32>
    %c0_15 = arith.constant 0 : index
    %c0_16 = arith.constant 0 : index
    %36 = vector.load %arg5[%c0_15, %c0_16] : memref<1x128xf32, #tpu.memory_space<vmem>>, vector<1x128xf32>
    %37 = vector.broadcast %36 : vector<1x128xf32> to vector<8x128xf32>
    %38 = arith.addf %35, %37 : vector<8x128xf32>
    %c0_17 = arith.constant 0 : index
    %c0_18 = arith.constant 0 : index
    %c0_19 = arith.constant 0 : index
    %39 = vector.load %arg6[%c0_17, %c0_18, %c0_19] : memref<4x8x128xf32, #tpu.memory_space<vmem>>, vector<1x8x128xf32>
    %40 = vector.shape_cast %39 : vector<1x8x128xf32> to vector<8x128xf32>
    %41 = arith.mulf %38, %40 : vector<8x128xf32>
    %cst_20 = arith.constant dense<0.000000e+00> : vector<8xf32>
    %42 = vector.multi_reduction <add>, %41, %cst_20 [1] : vector<8x128xf32> to vector<8xf32>
    %43 = vector.shape_cast %42 : vector<8xf32> to vector<8x1xf32>
    %c1 = arith.constant 1 : index
    %c0_21 = arith.constant 0 : index
    %c0_22 = arith.constant 0 : index
    %44 = vector.load %arg6[%c1, %c0_21, %c0_22] : memref<4x8x128xf32, #tpu.memory_space<vmem>>, vector<1x8x128xf32>
    %45 = vector.shape_cast %44 : vector<1x8x128xf32> to vector<8x128xf32>
    %46 = arith.mulf %38, %45 : vector<8x128xf32>
    %cst_23 = arith.constant dense<0.000000e+00> : vector<8xf32>
    %47 = vector.multi_reduction <add>, %46, %cst_23 [1] : vector<8x128xf32> to vector<8xf32>
    %48 = vector.shape_cast %47 : vector<8xf32> to vector<8x1xf32>
    %c2 = arith.constant 2 : index
    %c0_24 = arith.constant 0 : index
    %c0_25 = arith.constant 0 : index
    %49 = vector.load %arg6[%c2, %c0_24, %c0_25] : memref<4x8x128xf32, #tpu.memory_space<vmem>>, vector<1x8x128xf32>
    %50 = vector.shape_cast %49 : vector<1x8x128xf32> to vector<8x128xf32>
    %51 = arith.mulf %38, %50 : vector<8x128xf32>
    %cst_26 = arith.constant dense<0.000000e+00> : vector<8xf32>
    %52 = vector.multi_reduction <add>, %51, %cst_26 [1] : vector<8x128xf32> to vector<8xf32>
    %53 = vector.shape_cast %52 : vector<8xf32> to vector<8x1xf32>
    %c3 = arith.constant 3 : index
    %c0_27 = arith.constant 0 : index
    %c0_28 = arith.constant 0 : index
    %54 = vector.load %arg6[%c3, %c0_27, %c0_28] : memref<4x8x128xf32, #tpu.memory_space<vmem>>, vector<1x8x128xf32>
    %55 = vector.shape_cast %54 : vector<1x8x128xf32> to vector<8x128xf32>
    %56 = arith.mulf %38, %55 : vector<8x128xf32>
    %cst_29 = arith.constant dense<0.000000e+00> : vector<8xf32>
    %57 = vector.multi_reduction <add>, %56, %cst_29 [1] : vector<8x128xf32> to vector<8xf32>
    %58 = vector.shape_cast %57 : vector<8xf32> to vector<8x1xf32>
    %59 = tpu.concatenate %43, %48, %53, %58 in 1 : vector<8x1xf32>, vector<8x1xf32>, vector<8x1xf32>, vector<8x1xf32> -> vector<8x4xf32>
    %c0_30 = arith.constant 0 : index
    %c0_31 = arith.constant 0 : index
    %60 = vector.load %arg7[%c0_30, %c0_31] : memref<8x4xf32, #tpu.memory_space<vmem>>, vector<8x4xf32>
    %61 = arith.addf %59, %60 : vector<8x4xf32>
    %cst_32 = arith.constant dense<0xFF800000> : vector<8xf32>
    %62 = vector.multi_reduction <maximumf>, %61, %cst_32 [1] : vector<8x4xf32> to vector<8xf32>
    %63 = vector.shape_cast %62 : vector<8xf32> to vector<8x1xf32>
    %64 = vector.broadcast %63 : vector<8x1xf32> to vector<8x4xf32>
    %65 = arith.subf %61, %64 : vector<8x4xf32>
    %66 = math.exp %65 : vector<8x4xf32>
    %cst_33 = arith.constant dense<0.000000e+00> : vector<8xf32>
    %67 = vector.multi_reduction <add>, %66, %cst_33 [1] : vector<8x4xf32> to vector<8xf32>
    %68 = vector.shape_cast %67 : vector<8xf32> to vector<8x1xf32>
    %69 = vector.broadcast %68 : vector<8x1xf32> to vector<8x4xf32>
    %70 = arith.divf %66, %69 : vector<8x4xf32>
    %c0_34 = arith.constant 0 : index
    %c0_35 = arith.constant 0 : index
    %71 = vector.load %arg8[%c0_34, %c0_35] : memref<8x4xf32, #tpu.memory_space<vmem>>, vector<8x4xf32>
    tpu.vector_store %arg8[%c0_34, %c0_35], %70 {strides = array<i32>} : memref<8x4xf32, #tpu.memory_space<vmem>>, vector<8x4xf32>,
    return
  }
  func.func @transform_0(%arg0: i32) -> (i32, i32) {
    %c0_i32 = arith.constant 0 : i32
    %c0_i32_0 = arith.constant 0 : i32
    return %arg0, %c0_i32 : i32, i32
  }
  func.func @transform_1(%arg0: i32) -> (i32, i32) {
    %c0_i32 = arith.constant 0 : i32
    %c0_i32_0 = arith.constant 0 : i32
    %c0_i32_1 = arith.constant 0 : i32
    return %c0_i32, %c0_i32_0 : i32, i32
  }
  func.func @transform_2(%arg0: i32) -> (i32, i32) {
    %c0_i32 = arith.constant 0 : i32
    %c0_i32_0 = arith.constant 0 : i32
    %c0_i32_1 = arith.constant 0 : i32
    return %c0_i32, %c0_i32_0 : i32, i32
  }
  func.func @transform_3(%arg0: i32) -> (i32, i32) {
    %c0_i32 = arith.constant 0 : i32
    %c0_i32_0 = arith.constant 0 : i32
    %c0_i32_1 = arith.constant 0 : i32
    return %c0_i32, %c0_i32_0 : i32, i32
  }
  func.func @transform_4(%arg0: i32) -> (i32, i32) {
    %c0_i32 = arith.constant 0 : i32
    %c0_i32_0 = arith.constant 0 : i32
    %c0_i32_1 = arith.constant 0 : i32
    return %c0_i32, %c0_i32_0 : i32, i32
  }
  func.func @transform_5(%arg0: i32) -> (i32, i32, i32) {
    %c0_i32 = arith.constant 0 : i32
    %c0_i32_0 = arith.constant 0 : i32
    %c0_i32_1 = arith.constant 0 : i32
    return %c0_i32, %arg0, %c0_i32_0 : i32, i32, i32
  }
  func.func @transform_6(%arg0: i32) -> (i32, i32) {
    %c0_i32 = arith.constant 0 : i32
    %c0_i32_0 = arith.constant 0 : i32
    return %arg0, %c0_i32 : i32, i32
  }
  func.func @transform_7(%arg0: i32) -> (i32, i32) {
    %c0_i32 = arith.constant 0 : i32
    %c0_i32_0 = arith.constant 0 : i32
    return %arg0, %c0_i32 : i32, i32
  }
}

</mosaic_0001>

<bundles_post_ra>
// kernel: tpu_custom_call.1
= control target key start
LH: loop header
LB: loop body
LE: loop exit
PB: predicated region body
PF: predicated region fallthrough
CT: control target
= control target key end

     0   :  { %12 = vsyncpa [#allocation3], 0  ;;  %s468_s0 = inlined_call_operand.vmem [shape: f32[8,128], index: 0, kind: input, shape index: {}]   ;;  %s469_s1 = inlined_call_operand.hbm [shape: bf16[128,128], index: 1, kind: input, shape index: {}]   ;;  %s470_s2 = inlined_call_operand.vmem [shape: f32[1,128], index: 2, kind: input, shape index: {}]   ;;  %s471_s3 = inlined_call_operand.vmem [shape: f32[1,128], index: 3, kind: input, shape index: {}]   ;;  %s472_s4 = inlined_call_operand.vmem [shape: f32[1,128], index: 4, kind: input, shape index: {}]   ;;  %s473_s5 = inlined_call_operand.hbm [shape: f32[4,8,128], index: 5, kind: input, shape index: {}]   ;;  %s474_s6 = inlined_call_operand.vmem [shape: f32[8,4], index: 6, kind: input, shape index: {}]   ;;  %s475_s7 = inlined_call_operand.vmem [shape: f32[8,4], index: 7, kind: output, shape index: {}]  }
   0x1   :  { %s20_s26 = sshll.u32 %s469_s1, 4  ;;  %s21_s26 = int_to_ptr.hbm [resolvable:$true] %s20_s26 }
   0x2   :  { %13 = vsyncpa [#allocation5], 0  ;;  %s394_s27 = smov [#allocation2]   ;;  %s39_s8 = sshll.u32 %s473_s5, 4  ;;  %s40_s8 = int_to_ptr.hbm [resolvable:$true] %s39_s8 }
   0x3   :  { %s22_s28 = sshll.u32 %s394_s27, 4  ;;  %s395_s9 = smov 64   ;;  %s23_s28 = int_to_ptr.vmem [resolvable:$true] %s22_s28 }
   0x4   :  { %s396_s10 = smov 4   ;;  %s397_s11 = smov [#allocation4]  }
   0x5   :  { %28 = dma.hbm_to_vmem [thread:$0]  %s21_s26, 1024, %s23_s28, [#allocation3], %s395_s9, %s395_s9, %s396_s10  }
   0x6   :  { %s41_s12 = sshll.u32 %s397_s11, 4  ;;  %s398_s13 = smov 128   ;;  %s42_s12 = int_to_ptr.vmem [resolvable:$true] %s41_s12 }
   0x7   :  { %s399_s14 = smov 8  }
   0x8   :  { %47 = dma.hbm_to_vmem [thread:$0]  %s40_s8, 512, %s42_s12, [#allocation5], %s398_s13, %s398_s13, %s399_s14  }
   0x9   :  { %390 = dma.done.wait [#allocation3], 1024  }
   0xa   :  { %391 = vsyncadd [#allocation3], 4294966272 }
   0xb   :  { %392 = dma.done.wait [#allocation5], 512  }
   0xc   :  { %393 = vsyncadd [#allocation5], 4294966784  ;;  %v321_v0 = vld [vmem:[#allocation2 + $0x38] sm:$0xff]  ;;  %v320_v1 = vld [vmem:[#allocation2 + $0x30] sm:$0xff]  ;;  %v400_v53 = vmov 128.0   ;;  %vm241_vm8 = vcmask 7168  }
   0xd   :  { %128 = vmatpush.bf16.msra.mxu0 %v321_v0  ;;  %v319_v2 = vld [vmem:[#allocation2 + $0x28] sm:$0xff]  ;;  %v318_v3 = vld [vmem:[#allocation2 + $0x20] sm:$0xff]  ;;  %v317_v4 = vld [vmem:[#allocation2 + $0x18] sm:$0xff]  ;;  %vm243_vm9 = vcmask 15360   ;;  %vm245_vm10 = vcmask 23552   ;;  %vm249_vm11 = vcmask 31744  }
   0xe   :  { %v316_v5 = vld [vmem:[#allocation2 + $0x10] sm:$0xff]  ;;  %v315_v6 = vld [vmem:[#allocation2 + $0x8] sm:$0xff]  ;;  %v314_v7 = vld [vmem:[#allocation2] sm:$0xff] }
   0xf   :  { %v58_v8 = vld [vmem:[%s468_s0] sm:$0xff] }
  0x10   :  { %v59_v9 = vpack.c.bf16 %v58_v8, %v58_v8  ;;  %v329_v10 = vld [vmem:[%s470_s2] ss:$0 sm:$0xff] }
  0x11   :  { %129 = vmatpush.bf16.msra.mxu0 %v320_v1 }
  0x15   :  { %130 = vmatpush.bf16.msra.mxu0 %v319_v2 }
  0x19   :  { %131 = vmatpush.bf16.msra.mxu0 %v318_v3 }
  0x1d   :  { %132 = vmatpush.bf16.msra.mxu0 %v317_v4 }
  0x21   :  { %133 = vmatpush.bf16.msra.mxu0 %v316_v5 }
  0x25   :  { %134 = vmatpush.bf16.msra.mxu0 %v315_v6 }
  0x29   :  { %135 = vmatpush.bf16.msra.mxu0 %v314_v7 }
  0x2c   :  { %136 = vmatmul.bf16.vlgmr.msra.gmra.mxu0 %v59_v9  ;;  %v330_v9 = vld [vmem:[%s471_s3] ss:$0 sm:$0xff] }
  0xa9   :  { %v137_v11 = vpop.f32.mrf.mxu0 }
  0xaa   :  { %v138_v12 = vadd.f32 %v329_v10, %v137_v11 }
  0xac   :  { %v142_v13 = vmul.f32 0.70710677, %v138_v12  ;;  %v141_v50 = vmul.f32 0.5, %v138_v12  ;;  %v331_v12 = vld [vmem:[%s472_s4] ss:$0 sm:$0xff] }
  0xae   :  { %v143_v14 = vmul.f32 %v142_v13, %v142_v13 }
  0xb0   :  { %v144_v15 = vmin.f32 %v143_v14, 16.0  ;;  %v232_v14 = vld [vmem:[#allocation4 + $0x10] sm:$0xff] }
  0xb1   :  { %v139_v16 = vpop.f32.mrf.mxu0 }
  0xb2   :  { %v145_v17 = vmul.f32 2.1237322e-06, %v144_v15  ;;  %v156_v18 = vmul.f32 3.8918573e-05, %v144_v15 }
  0xb4   :  { %v146_v19 = vadd.f32 0.00028619796, %v145_v17  ;;  %v157_v20 = vadd.f32 0.001143296, %v156_v18 }
  0xb6   :  { %v147_v21 = vmul.f32 %v146_v19, %v144_v15  ;;  %v158_v22 = vmul.f32 %v157_v20, %v144_v15  ;;  %v237_v19 = vld [vmem:[#allocation4 + $0x18] sm:$0xff]  ;;  %v227_v20 = vld [vmem:[#allocation4 + $0x8] sm:$0xff] }
  0xb8   :  { %v159_v23 = vadd.f32 0.014752088, %v158_v22  ;;  %v148_v24 = vadd.f32 0.0036580483, %v147_v21 }
  0xba   :  { %v160_v25 = vmul.f32 %v159_v23, %v144_v15  ;;  %v149_v27 = vmul.f32 %v148_v24, %v144_v15 }
  0xbc   :  { %v161_v26 = vadd.f32 0.112945676, %v160_v25  ;;  %v150_v30 = vadd.f32 0.05243302, %v149_v27  ;;  %v247_v27 = vld [vmem:[%s474_s6] sm:$0xff] }
  0xbe   :  { %v162_v28 = vmul.f32 %v161_v26, %v144_v15  ;;  %v151_v33 = vmul.f32 %v150_v30, %v144_v15 }
  0xc0   :  { %v163_v29 = vadd.f32 0.4994258, %v162_v28  ;;  %v152_v34 = vadd.f32 0.18741608, %v151_v33 }
  0xc2   :  { %v164_v31 = vmul.f32 %v163_v29, %v144_v15  ;;  %v153_v36 = vmul.f32 %v152_v34, %v144_v15  ;;  %v222_v15 = vld [vmem:[#allocation4] sm:$0xff] }
  0xc4   :  { %v165_v32 = vadd.f32 1.0, %v164_v31  ;;  %v154_v40 = vadd.f32 1.1283791, %v153_v36 }
  0xc6   :  { %332 = vrcp.f32 %v165_v32  ;;  %v177_v39 = vand.u32 2147483648, %v165_v32  ;;  %v175_v42 = vand.u32 2147483647, %v165_v32  ;;  %vm171_vm1 = vweird.f32 %v165_v32 }
  0xc7   :  { %v155_v45 = vmul.f32 %v154_v40, %v142_v13  ;;  %334 = vrcp.f32 %v400_v53 }
  0xc8   :  { %v178_v44 = vor.u32 1.1754944e-38, %v177_v39  ;;  %vm176_vm3 = vcmp.eq.f32.partialorder %v175_v42, 8.507059e+37 }
  0xcc   :  { %v333_v35 = vpop.eup %332 }
  0xcd   :  { %v167_v37 = vmul.f32 %v333_v35, %v165_v32  ;;  %vm172_vm0 = vweird.f32 %v333_v35  ;;  %v335_v54 = vpop.eup %334 }
  0xce   :  { %vm173_vm2 = vmor %vm171_vm1, %vm172_vm0  ;;  %v188_v55 = vmul.f32 128.0, %v335_v54  ;;  %vm192_vm4 = vweird.f32 %v335_v54 }
  0xcf   :  { %v168_v38 = vsub.f32 1.0, %v167_v37 }
  0xd0   :  { %v189_v56 = vsub.f32 1.0, %v188_v55 }
  0xd1   :  { %v169_v41 = vmul.f32 %v333_v35, %v168_v38 }
  0xd2   :  { %v190_v57 = vmul.f32 %v335_v54, %v189_v56 }
  0xd3   :  { %v170_v43 = vadd.f32 %v333_v35, %v169_v41 }
  0xd4   :  { %v191_v58 = vadd.f32 %v335_v54, %v190_v57 }
  0xd5   :  { %v174_v46 = vsel %vm173_vm2, %v333_v35, %v170_v43 }
  0xd6   :  { %v179_v47 = vsel %vm176_vm3, %v178_v44, %v174_v46  ;;  %v193_v59 = vsel %vm192_vm4, %v335_v54, %v191_v58 }
  0xd7   :  { %v180_v48 = vmul.f32 %v179_v47, %v155_v45 }
  0xd9   :  { %v313_v49 = vclamps-f32 %v180_v48, 1.0 }
  0xdb   :  { %v183_v51 = vadd.f32 1.0, %v313_v49 }
  0xdd   :  { %v184_v52 = vmul.f32 %v183_v51, %v141_v50 }
  0xdf   :  { %185 = vadd.xlane.f32.xlu0 %v184_v52 }
 0x152   :  { %v186_v60 = vpop.xlane.xlu0 %185 }
 0x153   :  { %v194_v61 = vmul.f32 %v193_v59, %v186_v60 }
 0x155   :  { %v195_v62 = vsub.f32 %v184_v52, %v194_v61 }
 0x157   :  { %v196_v63 = vmul.f32 %v195_v62, %v195_v62 }
 0x159   :  { %197 = vadd.xlane.f32.xlu0 %v196_v63 }
 0x1cc   :  { %v198_v0 = vpop.xlane.xlu0 %197 }
 0x1cd   :  { %v199_v1 = vmul.f32 %v198_v0, %v193_v59 }
 0x1cf   :  { %v200_v2 = vadd.f32 1e-12, %v199_v1 }
 0x1d1   :  { %336 = vrsqrt.f32 %v200_v2  ;;  %vm207_vm6 = vweird.f32 %v200_v2 }
 0x1d7   :  { %v337_v3 = vpop.eup %336 }
 0x1d8   :  { %v202_v4 = vmul.f32 %v337_v3, %v200_v2  ;;  %vm208_vm5 = vweird.f32 %v337_v3 }
 0x1d9   :  { %vm209_vm7 = vmor %vm207_vm6, %vm208_vm5 }
 0x1da   :  { %v203_v5 = vmul.f32 %v337_v3, %v202_v4 }
 0x1dc   :  { %v204_v6 = vmul.f32 0.5, %v203_v5 }
 0x1de   :  { %v205_v7 = vsub.f32 1.5, %v204_v6 }
 0x1e0   :  { %v206_v8 = vmul.f32 %v337_v3, %v205_v7 }
 0x1e2   :  { %v210_v10 = vsel %vm209_vm7, %v337_v3, %v206_v8 }
 0x1e3   :  { %v211_v11 = vmul.f32 %v210_v10, %v195_v62 }
 0x1e5   :  { %v216_v13 = vmul.f32 %v330_v9, %v211_v11 }
 0x1e7   :  { %v221_v16 = vadd.f32 %v331_v12, %v216_v13 }
 0x1e9   :  { %v233_v17 = vmul.f32 %v232_v14, %v221_v16  ;;  %v223_v18 = vmul.f32 %v222_v15, %v221_v16  ;;  %v238_v21 = vmul.f32 %v237_v19, %v221_v16  ;;  %v228_v22 = vmul.f32 %v227_v20, %v221_v16 }
 0x1eb   :  { %234 = vadd.xlane.f32.xlu2 %v233_v17  ;;  %224 = vadd.xlane.f32.xlu1 %v223_v18 }
 0x1f3   :  { %239 = vadd.xlane.f32.xlu2 %v238_v21  ;;  %229 = vadd.xlane.f32.xlu1 %v228_v22 }
 0x25e   :  { %v235_v23 = vpop.xlane.xlu2 %234  ;;  %v225_v24 = vpop.xlane.xlu1 %224 }
 0x266   :  { %v230_v25 = vpop.xlane.xlu1 %229  ;;  %v240_v28 = vpop.xlane.xlu2 %239 }
 0x267   :  { %v242_v26 = vsel %vm241_vm8, %v225_v24, %v230_v25 }
 0x268   :  { %v244_v29 = vsel %vm243_vm9, %v242_v26, %v235_v23 }
 0x269   :  { %v246_v30 = vsel %vm245_vm10, %v244_v29, %v240_v28 }
 0x26a   :  { %v248_v31 = vadd.f32 %v247_v27, %v246_v30 }
 0x26c   :  { %v250_v32 = vsel %vm249_vm11, %v248_v31, -inf }
 0x26d   :  { %251 = vmax.xlane.f32.xlu0 %v250_v32 }
 0x2e0   :  { %v252_v33 = vpop.xlane.xlu0 %251 }
 0x2e1   :  { %v253_v34 = vsub.f32 %v248_v31, %v252_v33 }
 0x2e3   :  { %v254_v35 = vmul.f32 1.442695, %v253_v34 }
 0x2e5   :  { %338 = vpow2.f32 %v254_v35 }
 0x2eb   :  { %v339_v36 = vpop.eup %338 }
 0x2ec   :  { %v256_v37 = vsel %vm249_vm11, %v339_v36, 0.0 }
 0x2ed   :  { %257 = vadd.xlane.f32.xlu1 %v256_v37 }
 0x360   :  { %v258_v38 = vpop.xlane.xlu1 %257 }
 0x361   :  { %340 = vrcp.f32 %v258_v38  ;;  %v270_v42 = vand.u32 2147483648, %v258_v38  ;;  %v268_v44 = vand.u32 2147483647, %v258_v38  ;;  %vm264_vm13 = vweird.f32 %v258_v38 }
 0x363   :  { %v271_v46 = vor.u32 1.1754944e-38, %v270_v42  ;;  %vm269_vm15 = vcmp.eq.f32.partialorder %v268_v44, 8.507059e+37 }
 0x367   :  { %v341_v39 = vpop.eup %340 }
 0x368   :  { %v260_v40 = vmul.f32 %v341_v39, %v258_v38  ;;  %vm265_vm12 = vweird.f32 %v341_v39 }
 0x369   :  { %vm266_vm14 = vmor %vm264_vm13, %vm265_vm12 }
 0x36a   :  { %v261_v41 = vsub.f32 1.0, %v260_v40 }
 0x36c   :  { %v262_v43 = vmul.f32 %v341_v39, %v261_v41 }
 0x36e   :  { %v263_v45 = vadd.f32 %v341_v39, %v262_v43 }
 0x370   :  { %v267_v47 = vsel %vm266_vm14, %v341_v39, %v263_v45 }
 0x371   :  { %v272_v48 = vsel %vm269_vm15, %v271_v46, %v267_v47 }
 0x372   :  { %v273_v49 = vmul.f32 %v339_v36, %v272_v48 }
 0x374   :  { %274 = vst.msk [vmem:[%s475_s7] sm:$0xff] %vm249_vm11, %v273_v49 }
 0x375   :  { %279 = vsyncpa [#allocation3], 1 }
 0x376   :  { %280 = vsyncpa [#allocation5], 1 }

</bundles_post_ra>
